<compile_context>
chip_gen: v5e
topology: v5e:2x2
jax: 0.10.0
libtpu: 0.0.40
codegen_flags: <defaults>
</compile_context>

<pallas_src>
import functools
import math

import jax
import jax.numpy as jnp
from jax.experimental import pallas as pl
from jax.experimental.pallas import tpu as pltpu


_LN_EPS = 1e-5  # torch.nn.LayerNorm default eps
_SQRT_2_OVER_PI = math.sqrt(2.0 / math.pi)


def _gelu_tanh(x):
    # tanh-form GELU: one EUP tanh + a few VALU ops instead of the erf
    # polynomial + divide + exp (|delta| vs exact erf GELU ~1e-3).
    return 0.5 * x * (1.0 + jnp.tanh(_SQRT_2_OVER_PI * (x + 0.044715 * (x * x * x))))


def _layernorm(x, gamma, beta, eps=_LN_EPS):
    mu = jnp.mean(x, axis=-1, keepdims=True)
    xc = x - mu
    var = jnp.mean(xc * xc, axis=-1, keepdims=True)
    return xc * jax.lax.rsqrt(var + eps) * gamma + beta


# ----------------------------------------------------------------------------
# Pallas kernel: one full TransformerBlock, one (batch, query-tile) per step.
# ----------------------------------------------------------------------------
def _block_kernel(x_ref, wqvk_ref, wo_ref, bo_ref,
                  ln1_g_ref, ln1_b_ref,
                  w1_ref, b1_ref, w2_ref, b2_ref,
                  ln2_g_ref, ln2_b_ref,
                  out_ref,
                  qv_ref, kt_ref, ctx_ref,
                  *, n_heads, head_dim, q_tile, heads_per_group, compute_dtype):
    qi = pl.program_id(1)
    hidden = n_heads * head_dim

    # Fused QKV projection: computed once per batch element (first query tile)
    # and cached in VMEM scratch for all later tiles.  Columns of the fused
    # weight are ordered [Q*scale | V | K]; the K third is stored transposed
    # once so the per-head score matmul needs no per-tile relayout.
    @pl.when(qi == 0)
    def _():
        x_all = x_ref[...].astype(compute_dtype)                          # (S, H)
        qvk = jnp.dot(x_all, wqvk_ref[...],
                      preferred_element_type=jnp.float32)                 # (S, 3H)
        qv_ref[...] = qvk[:, 0:2 * hidden].astype(qv_ref.dtype)           # [Q | V]
        kt_ref[...] = qvk[:, 2 * hidden:3 * hidden].T.astype(kt_ref.dtype)  # K^T (H, S)

    row0 = pl.multiple_of(qi * q_tile, q_tile)
    x_tile = x_ref[pl.ds(row0, q_tile), :].astype(jnp.float32)            # residual stream
    q_t = qv_ref[pl.ds(row0, q_tile), 0:hidden]                           # (tq, H), pre-scaled

    # Per-head attention; unnormalized softmax -> PV -> (tq, hd) rescale.
    # PV results are written to the context scratch in lane-dense head groups.
    for g0 in range(0, n_heads, heads_per_group):
        pvs = []
        for h in range(g0, g0 + heads_per_group):
            c0 = h * head_dim
            qh = q_t[:, c0:c0 + head_dim]                                  # (tq, hd)
            kth = kt_ref[c0:c0 + head_dim, :]                              # (hd, S)
            vh = qv_ref[:, hidden + c0:hidden + c0 + head_dim]             # (S,  hd)

            scores = jnp.dot(qh, kth, preferred_element_type=jnp.float32)  # (tq, S)
            e = jnp.exp((scores - jnp.max(scores, axis=-1, keepdims=True)
                         ).astype(compute_dtype))                          # bf16 exp on v6e/v7x
            inv_den = pl.reciprocal(
                jnp.sum(e, axis=-1, keepdims=True, dtype=jnp.float32), approx=True)
            pv = jnp.dot(e, vh, preferred_element_type=jnp.float32)        # (tq, hd)
            pvs.append(pv * inv_den)                                       # normalize post-PV
        slab = pvs[0] if heads_per_group == 1 else jnp.concatenate(pvs, axis=1)
        ctx_ref[:, g0 * head_dim:(g0 + heads_per_group) * head_dim] = (
            slab.astype(ctx_ref.dtype))

    # Attention output projection + residual + LayerNorm1 (f32).
    attn = jnp.dot(ctx_ref[...], wo_ref[...],
                   preferred_element_type=jnp.float32) + bo_ref[...]
    n1 = _layernorm(x_tile + attn, ln1_g_ref[...], ln1_b_ref[...])

    # Feed-forward (Linear -> GELU -> Linear) + residual + LayerNorm2.
    h1 = jnp.dot(n1.astype(compute_dtype), w1_ref[...],
                 preferred_element_type=jnp.float32) + b1_ref[...]
    act = _gelu_tanh(h1.astype(compute_dtype))                             # bf16 GELU on v6e/v7x
    ff = jnp.dot(act, w2_ref[...], preferred_element_type=jnp.float32) + b2_ref[...]
    out_ref[...] = _layernorm(ff + n1, ln2_g_ref[...], ln2_b_ref[...]).astype(out_ref.dtype)


# ----------------------------------------------------------------------------
# Wrapper helpers.
# ----------------------------------------------------------------------------
def _choose_q_tile(seq_len, target=512):
    """Divisor of seq_len near `target` that is a multiple of 8 (or full S)."""
    if seq_len <= target:
        return seq_len
    best = seq_len
    for t in range(8, min(seq_len, 2 * target) + 1, 8):
        if seq_len % t == 0 and abs(t - target) < abs(best - target):
            best = t
    return best


def _heads_per_group(n_heads, head_dim):
    """Largest divisor g of n_heads with g*head_dim <= 128 (lane-dense stores)."""
    for cand in range(n_heads, 0, -1):
        if n_heads % cand == 0 and cand * head_dim <= 128:
            return cand
    return 1


def _default_vmem_limit_bytes():
    """Per-generation scoped-VMEM limit with headroom (never the full 64 MiB on v7x)."""
    try:
        cap = int(pltpu.get_tpu_info().vmem_capacity_bytes)
        return min(int(cap * 0.8), 100 * 1024 * 1024)   # ~51 MiB v7x, ~100 MiB v5e/v6e
    except Exception:
        return 64 * 1024 * 1024                          # conservative fallback


def _spec(shape, index_map, buffers=None):
    """BlockSpec with optional explicit buffer count (single-buffer grid-invariant operands)."""
    if buffers is not None:
        try:
            return pl.BlockSpec(shape, index_map, pipeline_mode=pl.Buffered(buffers))
        except TypeError:
            pass  # older JAX without pipeline_mode: default double-buffering
    return pl.BlockSpec(shape, index_map)


def transformer_block_forward(x, layer, *, n_heads,
                              compute_dtype=jnp.float32, q_tile=None):
    """Fused Pallas forward of one TransformerBlock (eval mode)."""
    B, S, H = x.shape
    assert H % n_heads == 0
    head_dim = H // n_heads
    ff_dim = layer["w1"].shape[1]
    if q_tile is None:
        q_tile = _choose_q_tile(S)
    assert S % q_tile == 0
    n_q = S // q_tile
    hpg = _heads_per_group(n_heads, head_dim)

    # Fused (H, 3H) weight, columns [Q*scale | V | K]; score scale baked into Q.
    scale = 1.0 / math.sqrt(head_dim)
    wqvk = jnp.concatenate([layer["wq"] * scale, layer["wv"], layer["wk"]],
                           axis=1).astype(compute_dtype)
    wo = layer["wo"].astype(compute_dtype)
    w1 = layer["w1"].astype(compute_dtype)
    w2 = layer["w2"].astype(compute_dtype)

    kernel = functools.partial(_block_kernel, n_heads=n_heads, head_dim=head_dim,
                               q_tile=q_tile, heads_per_group=hpg,
                               compute_dtype=compute_dtype)

    def _resident(shape):
        # Grid-invariant operand: constant index map => single buffer (the
        # default double-buffering only doubles resident weight VMEM).
        return _spec(shape, lambda b, qi: (0,) * len(shape), buffers=1)

    grid_spec = pltpu.PrefetchScalarGridSpec(
        num_scalar_prefetch=0,
        grid=(B, n_q),
        in_specs=[
            # Full sequence of one batch element; block index changes only
            # with b, so single-buffer it too (one exposed DMA per batch elem).
            _spec((None, S, H), lambda b, qi: (b, 0, 0), buffers=1),
            _resident((H, 3 * H)),                       # fused, pre-scaled QVK weight
            _resident((H, H)),                           # Wo
            _resident((1, H)),                           # out bias
            _resident((1, H)), _resident((1, H)),        # LayerNorm1 gamma / beta
            _resident((H, ff_dim)), _resident((1, ff_dim)),  # FFN W1 / b1
            _resident((ff_dim, H)), _resident((1, H)),       # FFN W2 / b2
            _resident((1, H)), _resident((1, H)),        # LayerNorm2 gamma / beta
        ],
        out_specs=pl.BlockSpec((None, q_tile, H), lambda b, qi: (b, qi, 0)),
        scratch_shapes=[
            pltpu.VMEM((S, 2 * H), compute_dtype),       # cached [Q*scale | V]
            pltpu.VMEM((H, S), compute_dtype),           # cached K^T
            pltpu.VMEM((q_tile, H), compute_dtype),      # per-tile attention context
        ],
    )

    return pl.pallas_call(
        kernel,
        out_shape=jax.ShapeDtypeStruct((B, S, H), x.dtype),
        grid_spec=grid_spec,
        compiler_params=pltpu.CompilerParams(
            dimension_semantics=("parallel", "arbitrary"),
            vmem_limit_bytes=_default_vmem_limit_bytes(),
        ),
    )(x, wqvk, wo, layer["bo"],
      layer["ln1_g"], layer["ln1_b"],
      w1, layer["b1"], w2, layer["b2"],
      layer["ln2_g"], layer["ln2_b"])


def transformer_encoder_forward(x, params, *, n_heads,
                                compute_dtype=jnp.float32, q_tile=None):
    """TransformerEncoder.forward (attention_mask=None, eval mode)."""
    for layer in params["layers"]:
        x = transformer_block_forward(x, layer, n_heads=n_heads,
                                      compute_dtype=compute_dtype, q_tile=q_tile)
    return x


# ----------------------------------------------------------------------------
# Pure-JAX reference mirroring the PyTorch forward (eval mode) + param init.
# ----------------------------------------------------------------------------
def _reference(x, params, *, n_heads, early_div=False):
    for p in params["layers"]:
        B, S, H = x.shape
        hd = H // n_heads
        q = x @ p["wq"]
        k = x @ p["wk"]
        v = x @ p["wv"]
        if early_div:
            q = q / math.sqrt(hd)

        def split(t):
            return t.reshape(B, S, n_heads, hd).transpose(0, 2, 1, 3)

        qh, kh, vh = split(q), split(k), split(v)
        s = jnp.einsum("bhqd,bhkd->bhqk", qh, kh)
        if not early_div:
            s = s / math.sqrt(hd)
        probs = jax.nn.softmax(s, axis=-1)
        ctx = jnp.einsum("bhqk,bhkd->bhqd", probs, vh)
        ctx = ctx.transpose(0, 2, 1, 3).reshape(B, S, H)
        y = x + (ctx @ p["wo"] + p["bo"])
        n1 = _layernorm(y, p["ln1_g"], p["ln1_b"])
        h1 = n1 @ p["w1"] + p["b1"]
        ff = jax.nn.gelu(h1, approximate=False) @ p["w2"] + p["b2"]
        x = _layernorm(ff + n1, p["ln2_g"], p["ln2_b"])
    return x


def init_params(key, *, hidden, n_heads, num_layers, expansion_factor=4):
    """Deterministic synthetic params. Linear weights stored as (in, out)."""
    del n_heads  # layout is independent of head count
    layers = []
    for lk in jax.random.split(key, num_layers):
        ks = jax.random.split(lk, 12)
        s = 1.0 / math.sqrt(hidden)
        sf = 1.0 / math.sqrt(expansion_factor * hidden)
        layers.append(dict(
            wq=s * jax.random.normal(ks[0], (hidden, hidden), jnp.float32),
            wk=s * jax.random.normal(ks[1], (hidden, hidden), jnp.float32),
            wv=s * jax.random.normal(ks[2], (hidden, hidden), jnp.float32),
            wo=s * jax.random.normal(ks[3], (hidden, hidden), jnp.float32),
            bo=s * jax.random.normal(ks[4], (1, hidden), jnp.float32),
            ln1_g=1.0 + 0.1 * jax.random.normal(ks[5], (1, hidden), jnp.float32),
            ln1_b=0.1 * jax.random.normal(ks[6], (1, hidden), jnp.float32),
            w1=s * jax.random.normal(ks[7], (hidden, expansion_factor * hidden), jnp.float32),
            b1=s * jax.random.normal(ks[8], (1, expansion_factor * hidden), jnp.float32),
            w2=sf * jax.random.normal(ks[9], (expansion_factor * hidden, hidden), jnp.float32),
            b2=sf * jax.random.normal(ks[10], (1, hidden), jnp.float32),
            ln2_g=1.0 + 0.1 * jax.random.normal(ks[11], (1, hidden), jnp.float32),
            ln2_b=jnp.zeros((1, hidden), jnp.float32),
        ))
    return {"layers": layers}


if __name__ == "__main__":
    # Small config consistent with the module (embed_dim divisible by n_heads):
    # batch=2, seq=8, hidden=32, heads=4, num_layers=2, expansion_factor=4.
    B, S, H, NH, NL = 2, 8, 32, 4, 2

    key = jax.random.PRNGKey(0)
    k_x, k_p = jax.random.split(key)
    x = jax.random.normal(k_x, (B, S, H), jnp.float32)
    params = init_params(k_p, hidden=H, n_heads=NH, num_layers=NL)

    # High-precision pure-JAX reference of the PyTorch forward (exact-erf GELU).
    with jax.default_matmul_precision("float32"):
        ref = _reference(x, params, n_heads=NH)

    # 1) f32 compute path. Tolerance leaves headroom for the EUP approximate
    #    reciprocal in the softmax, the tanh-form GELU (|delta| ~1e-3 vs exact
    #    erf), and MXU f32 pass decomposition; structural bugs give O(1) errors.
    out_f32 = jax.block_until_ready(
        transformer_encoder_forward(x, params, n_heads=NH, compute_dtype=jnp.float32))
    assert out_f32.shape == (B, S, H)
    assert jnp.allclose(out_f32, ref, atol=3e-2, rtol=2e-2), "f32 kernel mismatch"

    # 2) bf16 matmul-operand + bf16 elementwise path — production MXU/VPU mode.
    out_bf16 = jax.block_until_ready(
        transformer_encoder_forward(x, params, n_heads=NH, compute_dtype=jnp.bfloat16))
    assert out_bf16.shape == (B, S, H)
    assert jnp.allclose(out_bf16, ref, atol=1e-1, rtol=1e-1), "bf16 kernel mismatch"

    print("KERNEL_OK")
</pallas_src>

<mosaic_0001>
module attributes {stable_mosaic.version = 11 : i64} {
  func.func @_block_kernel(%arg0: i32, %arg1: i32, %arg2: memref<1x8x32xf32, #tpu.memory_space<vmem>>, %arg3: memref<32x96xf32, #tpu.memory_space<vmem>>, %arg4: memref<32x32xf32, #tpu.memory_space<vmem>>, %arg5: memref<1x32xf32, #tpu.memory_space<vmem>>, %arg6: memref<1x32xf32, #tpu.memory_space<vmem>>, %arg7: memref<1x32xf32, #tpu.memory_space<vmem>>, %arg8: memref<32x128xf32, #tpu.memory_space<vmem>>, %arg9: memref<1x128xf32, #tpu.memory_space<vmem>>, %arg10: memref<128x32xf32, #tpu.memory_space<vmem>>, %arg11: memref<1x32xf32, #tpu.memory_space<vmem>>, %arg12: memref<1x32xf32, #tpu.memory_space<vmem>>, %arg13: memref<1x32xf32, #tpu.memory_space<vmem>>, %arg14: memref<1x8x32xf32, #tpu.memory_space<vmem>>, %arg15: memref<8x64xf32, #tpu.memory_space<vmem>>, %arg16: memref<32x8xf32, #tpu.memory_space<vmem>>, %arg17: memref<8x32xf32, #tpu.memory_space<vmem>>) attributes {dimension_semantics = [#tpu.dimension_semantics<parallel>, #tpu.dimension_semantics<arbitrary>], iteration_bounds = array<i64: 2, 1>, scalar_prefetch = 0 : i64, scratch_operands = 3 : i64, tpu.core_type = #tpu.core_type<tc>, window_params = [{pipeline_mode = #tpu.pipeline_mode<synchronous>, transform_indices = @transform_0, window_bounds = array<i64: 1, 8, 32>}, {pipeline_mode = #tpu.pipeline_mode<synchronous>, transform_indices = @transform_1, window_bounds = array<i64: 32, 96>}, {pipeline_mode = #tpu.pipeline_mode<synchronous>, transform_indices = @transform_2, window_bounds = array<i64: 32, 32>}, {pipeline_mode = #tpu.pipeline_mode<synchronous>, transform_indices = @transform_3, window_bounds = array<i64: 1, 32>}, {pipeline_mode = #tpu.pipeline_mode<synchronous>, transform_indices = @transform_4, window_bounds = array<i64: 1, 32>}, {pipeline_mode = #tpu.pipeline_mode<synchronous>, transform_indices = @transform_5, window_bounds = array<i64: 1, 32>}, {pipeline_mode = #tpu.pipeline_mode<synchronous>, transform_indices = @transform_6, window_bounds = array<i64: 32, 128>}, {pipeline_mode = #tpu.pipeline_mode<synchronous>, transform_indices = @transform_7, window_bounds = array<i64: 1, 128>}, {pipeline_mode = #tpu.pipeline_mode<synchronous>, transform_indices = @transform_8, window_bounds = array<i64: 128, 32>}, {pipeline_mode = #tpu.pipeline_mode<synchronous>, transform_indices = @transform_9, window_bounds = array<i64: 1, 32>}, {pipeline_mode = #tpu.pipeline_mode<synchronous>, transform_indices = @transform_10, window_bounds = array<i64: 1, 32>}, {pipeline_mode = #tpu.pipeline_mode<synchronous>, transform_indices = @transform_11, window_bounds = array<i64: 1, 32>}, {transform_indices = @transform_12, window_bounds = array<i64: 1, 8, 32>}]} {
    %c0_i32 = arith.constant 0 : i32
    %0 = arith.cmpi eq, %arg1, %c0_i32 : i32
    %1 = arith.extui %0 : i1 to i32
    %c0_i32_0 = arith.constant 0 : i32
    %2 = arith.cmpi ne, %1, %c0_i32_0 : i32
    scf.if %2 {
      %c0_71 = arith.constant 0 : index
      %c0_72 = arith.constant 0 : index
      %c0_73 = arith.constant 0 : index
      %150 = vector.load %arg2[%c0_71, %c0_72, %c0_73] : memref<1x8x32xf32, #tpu.memory_space<vmem>>, vector<1x8x32xf32>
      %151 = vector.shape_cast %150 : vector<1x8x32xf32> to vector<8x32xf32>
      %c0_74 = arith.constant 0 : index
      %c0_75 = arith.constant 0 : index
      %152 = vector.load %arg3[%c0_74, %c0_75] : memref<32x96xf32, #tpu.memory_space<vmem>>, vector<32x96xf32>
      %cst_76 = arith.constant dense<0.000000e+00> : vector<8x96xf32>
      %153 = tpu.matmul %151, %152, %cst_76 {dimension_numbers = #tpu.dot_dimension_numbers<[1], [0], [0], [1], [0, 0, 1, 1], [], []>} : vector<8x32xf32>, vector<32x96xf32>, vector<8x96xf32> -> vector<8x96xf32>
      %154 = vector.extract_strided_slice %153 {offsets = [0, 0], sizes = [8, 64], strides = [1, 1]} : vector<8x96xf32> to vector<8x64xf32>
      %c0_77 = arith.constant 0 : index
      %c0_78 = arith.constant 0 : index
      %155 = vector.load %arg15[%c0_77, %c0_78] : memref<8x64xf32, #tpu.memory_space<vmem>>, vector<8x64xf32>
      tpu.vector_store %arg15[%c0_77, %c0_78], %154 {strides = array<i32>} : memref<8x64xf32, #tpu.memory_space<vmem>>, vector<8x64xf32>,
      %156 = vector.extract_strided_slice %153 {offsets = [0, 64], sizes = [8, 32], strides = [1, 1]} : vector<8x96xf32> to vector<8x32xf32>
      %157 = tpu.transpose %156, [1, 0] : vector<8x32xf32> -> vector<32x8xf32>
      %c0_79 = arith.constant 0 : index
      %c0_80 = arith.constant 0 : index
      %158 = vector.load %arg16[%c0_79, %c0_80] : memref<32x8xf32, #tpu.memory_space<vmem>>, vector<32x8xf32>
      tpu.vector_store %arg16[%c0_79, %c0_80], %157 {strides = array<i32>} : memref<32x8xf32, #tpu.memory_space<vmem>>, vector<32x8xf32>,
    } else {
    }
    %c8_i32 = arith.constant 8 : i32
    %3 = arith.muli %arg1, %c8_i32 : i32
    %4 = tpu.assume_multiple %3, 8 : i32
    %c0 = arith.constant 0 : index
    %5 = arith.index_cast %4 : i32 to index
    %c0_1 = arith.constant 0 : index
    %6 = vector.load %arg2[%c0, %5, %c0_1] : memref<1x8x32xf32, #tpu.memory_space<vmem>>, vector<1x8x32xf32>
    %7 = vector.shape_cast %6 : vector<1x8x32xf32> to vector<8x32xf32>
    %8 = arith.index_cast %4 : i32 to index
    %c0_2 = arith.constant 0 : index
    %9 = vector.load %arg15[%8, %c0_2] : memref<8x64xf32, #tpu.memory_space<vmem>>, vector<8x32xf32>
    %10 = vector.extract_strided_slice %9 {offsets = [0, 0], sizes = [8, 8], strides = [1, 1]} : vector<8x32xf32> to vector<8x8xf32>
    %c0_3 = arith.constant 0 : index
    %c0_4 = arith.constant 0 : index
    %11 = vector.load %arg16[%c0_3, %c0_4] : memref<32x8xf32, #tpu.memory_space<vmem>>, vector<8x8xf32>
    %c0_5 = arith.constant 0 : index
    %c32 = arith.constant 32 : index
    %12 = vector.load %arg15[%c0_5, %c32] : memref<8x64xf32, #tpu.memory_space<vmem>>, vector<8x8xf32>
    %cst = arith.constant dense<0.000000e+00> : vector<8x8xf32>
    %13 = tpu.matmul %10, %11, %cst {dimension_numbers = #tpu.dot_dimension_numbers<[1], [0], [0], [1], [0, 0, 1, 1], [], []>} : vector<8x8xf32>, vector<8x8xf32>, vector<8x8xf32> -> vector<8x8xf32>
    %cst_6 = arith.constant dense<0xFF800000> : vector<8xf32>
    %14 = vector.multi_reduction <maximumf>, %13, %cst_6 [1] : vector<8x8xf32> to vector<8xf32>
    %15 = vector.shape_cast %14 : vector<8xf32> to vector<8x1xf32>
    %16 = vector.broadcast %15 : vector<8x1xf32> to vector<8x8xf32>
    %17 = arith.subf %13, %16 : vector<8x8xf32>
    %18 = math.exp %17 : vector<8x8xf32>
    %cst_7 = arith.constant dense<0.000000e+00> : vector<8xf32>
    %19 = vector.multi_reduction <add>, %18, %cst_7 [1] : vector<8x8xf32> to vector<8xf32>
    %20 = vector.shape_cast %19 : vector<8xf32> to vector<8x1xf32>
    %21 = tpu.reciprocal %20 {approx = true} : vector<8x1xf32> -> vector<8x1xf32>
    %cst_8 = arith.constant dense<0.000000e+00> : vector<8x8xf32>
    %22 = tpu.matmul %18, %12, %cst_8 {dimension_numbers = #tpu.dot_dimension_numbers<[1], [0], [0], [1], [0, 0, 1, 1], [], []>} : vector<8x8xf32>, vector<8x8xf32>, vector<8x8xf32> -> vector<8x8xf32>
    %23 = vector.broadcast %21 : vector<8x1xf32> to vector<8x8xf32>
    %24 = arith.mulf %22, %23 : vector<8x8xf32>
    %25 = vector.extract_strided_slice %9 {offsets = [0, 8], sizes = [8, 8], strides = [1, 1]} : vector<8x32xf32> to vector<8x8xf32>
    %c8 = arith.constant 8 : index
    %c0_9 = arith.constant 0 : index
    %26 = vector.load %arg16[%c8, %c0_9] : memref<32x8xf32, #tpu.memory_space<vmem>>, vector<8x8xf32>
    %c0_10 = arith.constant 0 : index
    %c40 = arith.constant 40 : index
    %27 = vector.load %arg15[%c0_10, %c40] : memref<8x64xf32, #tpu.memory_space<vmem>>, vector<8x8xf32>
    %cst_11 = arith.constant dense<0.000000e+00> : vector<8x8xf32>
    %28 = tpu.matmul %25, %26, %cst_11 {dimension_numbers = #tpu.dot_dimension_numbers<[1], [0], [0], [1], [0, 0, 1, 1], [], []>} : vector<8x8xf32>, vector<8x8xf32>, vector<8x8xf32> -> vector<8x8xf32>
    %cst_12 = arith.constant dense<0xFF800000> : vector<8xf32>
    %29 = vector.multi_reduction <maximumf>, %28, %cst_12 [1] : vector<8x8xf32> to vector<8xf32>
    %30 = vector.shape_cast %29 : vector<8xf32> to vector<8x1xf32>
    %31 = vector.broadcast %30 : vector<8x1xf32> to vector<8x8xf32>
    %32 = arith.subf %28, %31 : vector<8x8xf32>
    %33 = math.exp %32 : vector<8x8xf32>
    %cst_13 = arith.constant dense<0.000000e+00> : vector<8xf32>
    %34 = vector.multi_reduction <add>, %33, %cst_13 [1] : vector<8x8xf32> to vector<8xf32>
    %35 = vector.shape_cast %34 : vector<8xf32> to vector<8x1xf32>
    %36 = tpu.reciprocal %35 {approx = true} : vector<8x1xf32> -> vector<8x1xf32>
    %cst_14 = arith.constant dense<0.000000e+00> : vector<8x8xf32>
    %37 = tpu.matmul %33, %27, %cst_14 {dimension_numbers = #tpu.dot_dimension_numbers<[1], [0], [0], [1], [0, 0, 1, 1], [], []>} : vector<8x8xf32>, vector<8x8xf32>, vector<8x8xf32> -> vector<8x8xf32>
    %38 = vector.broadcast %36 : vector<8x1xf32> to vector<8x8xf32>
    %39 = arith.mulf %37, %38 : vector<8x8xf32>
    %40 = vector.extract_strided_slice %9 {offsets = [0, 16], sizes = [8, 8], strides = [1, 1]} : vector<8x32xf32> to vector<8x8xf32>
    %c16 = arith.constant 16 : index
    %c0_15 = arith.constant 0 : index
    %41 = vector.load %arg16[%c16, %c0_15] : memref<32x8xf32, #tpu.memory_space<vmem>>, vector<8x8xf32>
    %c0_16 = arith.constant 0 : index
    %c48 = arith.constant 48 : index
    %42 = vector.load %arg15[%c0_16, %c48] : memref<8x64xf32, #tpu.memory_space<vmem>>, vector<8x8xf32>
    %cst_17 = arith.constant dense<0.000000e+00> : vector<8x8xf32>
    %43 = tpu.matmul %40, %41, %cst_17 {dimension_numbers = #tpu.dot_dimension_numbers<[1], [0], [0], [1], [0, 0, 1, 1], [], []>} : vector<8x8xf32>, vector<8x8xf32>, vector<8x8xf32> -> vector<8x8xf32>
    %cst_18 = arith.constant dense<0xFF800000> : vector<8xf32>
    %44 = vector.multi_reduction <maximumf>, %43, %cst_18 [1] : vector<8x8xf32> to vector<8xf32>
    %45 = vector.shape_cast %44 : vector<8xf32> to vector<8x1xf32>
    %46 = vector.broadcast %45 : vector<8x1xf32> to vector<8x8xf32>
    %47 = arith.subf %43, %46 : vector<8x8xf32>
    %48 = math.exp %47 : vector<8x8xf32>
    %cst_19 = arith.constant dense<0.000000e+00> : vector<8xf32>
    %49 = vector.multi_reduction <add>, %48, %cst_19 [1] : vector<8x8xf32> to vector<8xf32>
    %50 = vector.shape_cast %49 : vector<8xf32> to vector<8x1xf32>
    %51 = tpu.reciprocal %50 {approx = true} : vector<8x1xf32> -> vector<8x1xf32>
    %cst_20 = arith.constant dense<0.000000e+00> : vector<8x8xf32>
    %52 = tpu.matmul %48, %42, %cst_20 {dimension_numbers = #tpu.dot_dimension_numbers<[1], [0], [0], [1], [0, 0, 1, 1], [], []>} : vector<8x8xf32>, vector<8x8xf32>, vector<8x8xf32> -> vector<8x8xf32>
    %53 = vector.broadcast %51 : vector<8x1xf32> to vector<8x8xf32>
    %54 = arith.mulf %52, %53 : vector<8x8xf32>
    %55 = vector.extract_strided_slice %9 {offsets = [0, 24], sizes = [8, 8], strides = [1, 1]} : vector<8x32xf32> to vector<8x8xf32>
    %c24 = arith.constant 24 : index
    %c0_21 = arith.constant 0 : index
    %56 = vector.load %arg16[%c24, %c0_21] : memref<32x8xf32, #tpu.memory_space<vmem>>, vector<8x8xf32>
    %c0_22 = arith.constant 0 : index
    %c56 = arith.constant 56 : index
    %57 = vector.load %arg15[%c0_22, %c56] : memref<8x64xf32, #tpu.memory_space<vmem>>, vector<8x8xf32>
    %cst_23 = arith.constant dense<0.000000e+00> : vector<8x8xf32>
    %58 = tpu.matmul %55, %56, %cst_23 {dimension_numbers = #tpu.dot_dimension_numbers<[1], [0], [0], [1], [0, 0, 1, 1], [], []>} : vector<8x8xf32>, vector<8x8xf32>, vector<8x8xf32> -> vector<8x8xf32>
    %cst_24 = arith.constant dense<0xFF800000> : vector<8xf32>
    %59 = vector.multi_reduction <maximumf>, %58, %cst_24 [1] : vector<8x8xf32> to vector<8xf32>
    %60 = vector.shape_cast %59 : vector<8xf32> to vector<8x1xf32>
    %61 = vector.broadcast %60 : vector<8x1xf32> to vector<8x8xf32>
    %62 = arith.subf %58, %61 : vector<8x8xf32>
    %63 = math.exp %62 : vector<8x8xf32>
    %cst_25 = arith.constant dense<0.000000e+00> : vector<8xf32>
    %64 = vector.multi_reduction <add>, %63, %cst_25 [1] : vector<8x8xf32> to vector<8xf32>
    %65 = vector.shape_cast %64 : vector<8xf32> to vector<8x1xf32>
    %66 = tpu.reciprocal %65 {approx = true} : vector<8x1xf32> -> vector<8x1xf32>
    %cst_26 = arith.constant dense<0.000000e+00> : vector<8x8xf32>
    %67 = tpu.matmul %63, %57, %cst_26 {dimension_numbers = #tpu.dot_dimension_numbers<[1], [0], [0], [1], [0, 0, 1, 1], [], []>} : vector<8x8xf32>, vector<8x8xf32>, vector<8x8xf32> -> vector<8x8xf32>
    %68 = vector.broadcast %66 : vector<8x1xf32> to vector<8x8xf32>
    %69 = arith.mulf %67, %68 : vector<8x8xf32>
    %70 = tpu.concatenate %24, %39, %54, %69 in 1 : vector<8x8xf32>, vector<8x8xf32>, vector<8x8xf32>, vector<8x8xf32> -> vector<8x32xf32>
    %c0_27 = arith.constant 0 : index
    %c0_28 = arith.constant 0 : index
    %71 = vector.load %arg17[%c0_27, %c0_28] : memref<8x32xf32, #tpu.memory_space<vmem>>, vector<8x32xf32>
    tpu.vector_store %arg17[%c0_27, %c0_28], %70 {strides = array<i32>} : memref<8x32xf32, #tpu.memory_space<vmem>>, vector<8x32xf32>,
    %c0_29 = arith.constant 0 : index
    %c0_30 = arith.constant 0 : index
    %72 = vector.load %arg17[%c0_29, %c0_30] : memref<8x32xf32, #tpu.memory_space<vmem>>, vector<8x32xf32>
    %c0_31 = arith.constant 0 : index
    %c0_32 = arith.constant 0 : index
    %73 = vector.load %arg4[%c0_31, %c0_32] : memref<32x32xf32, #tpu.memory_space<vmem>>, vector<32x32xf32>
    %cst_33 = arith.constant dense<0.000000e+00> : vector<8x32xf32>
    %74 = tpu.matmul %72, %73, %cst_33 {dimension_numbers = #tpu.dot_dimension_numbers<[1], [0], [0], [1], [0, 0, 1, 1], [], []>} : vector<8x32xf32>, vector<32x32xf32>, vector<8x32xf32> -> vector<8x32xf32>
    %c0_34 = arith.constant 0 : index
    %c0_35 = arith.constant 0 : index
    %75 = vector.load %arg5[%c0_34, %c0_35] : memref<1x32xf32, #tpu.memory_space<vmem>>, vector<1x32xf32>
    %76 = vector.broadcast %75 : vector<1x32xf32> to vector<8x32xf32>
    %77 = arith.addf %74, %76 : vector<8x32xf32>
    %78 = arith.addf %7, %77 : vector<8x32xf32>
    %c0_36 = arith.constant 0 : index
    %c0_37 = arith.constant 0 : index
    %79 = vector.load %arg6[%c0_36, %c0_37] : memref<1x32xf32, #tpu.memory_space<vmem>>, vector<1x32xf32>
    %c0_38 = arith.constant 0 : index
    %c0_39 = arith.constant 0 : index
    %80 = vector.load %arg7[%c0_38, %c0_39] : memref<1x32xf32, #tpu.memory_space<vmem>>, vector<1x32xf32>
    %cst_40 = arith.constant dense<0.000000e+00> : vector<8xf32>
    %81 = vector.multi_reduction <add>, %78, %cst_40 [1] : vector<8x32xf32> to vector<8xf32>
    %82 = vector.shape_cast %81 : vector<8xf32> to vector<8x1xf32>
    %cst_41 = arith.constant 3.200000e+01 : f32
    %83 = vector.broadcast %cst_41 : f32 to vector<8x1xf32>
    %84 = arith.divf %82, %83 : vector<8x1xf32>
    %85 = vector.broadcast %84 : vector<8x1xf32> to vector<8x32xf32>
    %86 = arith.subf %78, %85 : vector<8x32xf32>
    %87 = arith.mulf %86, %86 : vector<8x32xf32>
    %cst_42 = arith.constant dense<0.000000e+00> : vector<8xf32>
    %88 = vector.multi_reduction <add>, %87, %cst_42 [1] : vector<8x32xf32> to vector<8xf32>
    %89 = vector.shape_cast %88 : vector<8xf32> to vector<8x1xf32>
    %cst_43 = arith.constant 3.200000e+01 : f32
    %90 = vector.broadcast %cst_43 : f32 to vector<8x1xf32>
    %91 = arith.divf %89, %90 : vector<8x1xf32>
    %cst_44 = arith.constant 9.99999974E-6 : f32
    %92 = vector.broadcast %cst_44 : f32 to vector<8x1xf32>
    %93 = arith.addf %91, %92 : vector<8x1xf32>
    %94 = math.rsqrt %93 : vector<8x1xf32>
    %95 = vector.broadcast %94 : vector<8x1xf32> to vector<8x32xf32>
    %96 = arith.mulf %86, %95 : vector<8x32xf32>
    %97 = vector.broadcast %79 : vector<1x32xf32> to vector<8x32xf32>
    %98 = arith.mulf %96, %97 : vector<8x32xf32>
    %99 = vector.broadcast %80 : vector<1x32xf32> to vector<8x32xf32>
    %100 = arith.addf %98, %99 : vector<8x32xf32>
    %c0_45 = arith.constant 0 : index
    %c0_46 = arith.constant 0 : index
    %101 = vector.load %arg8[%c0_45, %c0_46] : memref<32x128xf32, #tpu.memory_space<vmem>>, vector<32x128xf32>
    %cst_47 = arith.constant dense<0.000000e+00> : vector<8x128xf32>
    %102 = tpu.matmul %100, %101, %cst_47 {dimension_numbers = #tpu.dot_dimension_numbers<[1], [0], [0], [1], [0, 0, 1, 1], [], []>} : vector<8x32xf32>, vector<32x128xf32>, vector<8x128xf32> -> vector<8x128xf32>
    %c0_48 = arith.constant 0 : index
    %c0_49 = arith.constant 0 : index
    %103 = vector.load %arg9[%c0_48, %c0_49] : memref<1x128xf32, #tpu.memory_space<vmem>>, vector<1x128xf32>
    %104 = vector.broadcast %103 : vector<1x128xf32> to vector<8x128xf32>
    %105 = arith.addf %102, %104 : vector<8x128xf32>
    %cst_50 = arith.constant 5.000000e-01 : f32
    %106 = vector.broadcast %cst_50 : f32 to vector<8x128xf32>
    %107 = arith.mulf %106, %105 : vector<8x128xf32>
    %108 = arith.mulf %105, %105 : vector<8x128xf32>
    %109 = arith.mulf %108, %105 : vector<8x128xf32>
    %cst_51 = arith.constant 4.471500e-02 : f32
    %110 = vector.broadcast %cst_51 : f32 to vector<8x128xf32>
    %111 = arith.mulf %110, %109 : vector<8x128xf32>
    %112 = arith.addf %105, %111 : vector<8x128xf32>
    %cst_52 = arith.constant 0.797884583 : f32
    %113 = vector.broadcast %cst_52 : f32 to vector<8x128xf32>
    %114 = arith.mulf %113, %112 : vector<8x128xf32>
    %115 = math.tanh %114 : vector<8x128xf32>
    %cst_53 = arith.constant 1.000000e+00 : f32
    %116 = vector.broadcast %cst_53 : f32 to vector<8x128xf32>
    %117 = arith.addf %116, %115 : vector<8x128xf32>
    %118 = arith.mulf %107, %117 : vector<8x128xf32>
    %c0_54 = arith.constant 0 : index
    %c0_55 = arith.constant 0 : index
    %119 = vector.load %arg10[%c0_54, %c0_55] : memref<128x32xf32, #tpu.memory_space<vmem>>, vector<128x32xf32>
    %cst_56 = arith.constant dense<0.000000e+00> : vector<8x32xf32>
    %120 = tpu.matmul %118, %119, %cst_56 {dimension_numbers = #tpu.dot_dimension_numbers<[1], [0], [0], [1], [0, 0, 1, 1], [], []>} : vector<8x128xf32>, vector<128x32xf32>, vector<8x32xf32> -> vector<8x32xf32>
    %c0_57 = arith.constant 0 : index
    %c0_58 = arith.constant 0 : index
    %121 = vector.load %arg11[%c0_57, %c0_58] : memref<1x32xf32, #tpu.memory_space<vmem>>, vector<1x32xf32>
    %122 = vector.broadcast %121 : vector<1x32xf32> to vector<8x32xf32>
    %123 = arith.addf %120, %122 : vector<8x32xf32>
    %124 = arith.addf %123, %100 : vector<8x32xf32>
    %c0_59 = arith.constant 0 : index
    %c0_60 = arith.constant 0 : index
    %125 = vector.load %arg12[%c0_59, %c0_60] : memref<1x32xf32, #tpu.memory_space<vmem>>, vector<1x32xf32>
    %c0_61 = arith.constant 0 : index
    %c0_62 = arith.constant 0 : index
    %126 = vector.load %arg13[%c0_61, %c0_62] : memref<1x32xf32, #tpu.memory_space<vmem>>, vector<1x32xf32>
    %cst_63 = arith.constant dense<0.000000e+00> : vector<8xf32>
    %127 = vector.multi_reduction <add>, %124, %cst_63 [1] : vector<8x32xf32> to vector<8xf32>
    %128 = vector.shape_cast %127 : vector<8xf32> to vector<8x1xf32>
    %cst_64 = arith.constant 3.200000e+01 : f32
    %129 = vector.broadcast %cst_64 : f32 to vector<8x1xf32>
    %130 = arith.divf %128, %129 : vector<8x1xf32>
    %131 = vector.broadcast %130 : vector<8x1xf32> to vector<8x32xf32>
    %132 = arith.subf %124, %131 : vector<8x32xf32>
    %133 = arith.mulf %132, %132 : vector<8x32xf32>
    %cst_65 = arith.constant dense<0.000000e+00> : vector<8xf32>
    %134 = vector.multi_reduction <add>, %133, %cst_65 [1] : vector<8x32xf32> to vector<8xf32>
    %135 = vector.shape_cast %134 : vector<8xf32> to vector<8x1xf32>
    %cst_66 = arith.constant 3.200000e+01 : f32
    %136 = vector.broadcast %cst_66 : f32 to vector<8x1xf32>
    %137 = arith.divf %135, %136 : vector<8x1xf32>
    %cst_67 = arith.constant 9.99999974E-6 : f32
    %138 = vector.broadcast %cst_67 : f32 to vector<8x1xf32>
    %139 = arith.addf %137, %138 : vector<8x1xf32>
    %140 = math.rsqrt %139 : vector<8x1xf32>
    %141 = vector.broadcast %140 : vector<8x1xf32> to vector<8x32xf32>
    %142 = arith.mulf %132, %141 : vector<8x32xf32>
    %143 = vector.broadcast %125 : vector<1x32xf32> to vector<8x32xf32>
    %144 = arith.mulf %142, %143 : vector<8x32xf32>
    %145 = vector.broadcast %126 : vector<1x32xf32> to vector<8x32xf32>
    %146 = arith.addf %144, %145 : vector<8x32xf32>
    %c0_68 = arith.constant 0 : index
    %c0_69 = arith.constant 0 : index
    %c0_70 = arith.constant 0 : index
    %147 = vector.load %arg14[%c0_68, %c0_69, %c0_70] : memref<1x8x32xf32, #tpu.memory_space<vmem>>, vector<1x8x32xf32>
    %148 = vector.shape_cast %147 : vector<1x8x32xf32> to vector<8x32xf32>
    %149 = vector.shape_cast %146 : vector<8x32xf32> to vector<1x8x32xf32>
    tpu.vector_store %arg14[%c0_68, %c0_69, %c0_70], %149 {strides = array<i32>} : memref<1x8x32xf32, #tpu.memory_space<vmem>>, vector<1x8x32xf32>,
    return
  }
  func.func @transform_0(%arg0: i32, %arg1: i32) -> (i32, i32, i32) {
    %c0_i32 = arith.constant 0 : i32
    %c0_i32_0 = arith.constant 0 : i32
    %c0_i32_1 = arith.constant 0 : i32
    return %arg0, %c0_i32, %c0_i32_0 : i32, i32, i32
  }
  func.func @transform_1(%arg0: i32, %arg1: i32) -> (i32, i32) {
    %c0_i32 = arith.constant 0 : i32
    %c0_i32_0 = arith.constant 0 : i32
    %c0_i32_1 = arith.constant 0 : i32
    return %c0_i32, %c0_i32_0 : i32, i32
  }
  func.func @transform_2(%arg0: i32, %arg1: i32) -> (i32, i32) {
    %c0_i32 = arith.constant 0 : i32
    %c0_i32_0 = arith.constant 0 : i32
    %c0_i32_1 = arith.constant 0 : i32
    return %c0_i32, %c0_i32_0 : i32, i32
  }
  func.func @transform_3(%arg0: i32, %arg1: i32) -> (i32, i32) {
    %c0_i32 = arith.constant 0 : i32
    %c0_i32_0 = arith.constant 0 : i32
    %c0_i32_1 = arith.constant 0 : i32
    return %c0_i32, %c0_i32_0 : i32, i32
  }
  func.func @transform_4(%arg0: i32, %arg1: i32) -> (i32, i32) {
    %c0_i32 = arith.constant 0 : i32
    %c0_i32_0 = arith.constant 0 : i32
    %c0_i32_1 = arith.constant 0 : i32
    return %c0_i32, %c0_i32_0 : i32, i32
  }
  func.func @transform_5(%arg0: i32, %arg1: i32) -> (i32, i32) {
    %c0_i32 = arith.constant 0 : i32
    %c0_i32_0 = arith.constant 0 : i32
    %c0_i32_1 = arith.constant 0 : i32
    return %c0_i32, %c0_i32_0 : i32, i32
  }
  func.func @transform_6(%arg0: i32, %arg1: i32) -> (i32, i32) {
    %c0_i32 = arith.constant 0 : i32
    %c0_i32_0 = arith.constant 0 : i32
    %c0_i32_1 = arith.constant 0 : i32
    return %c0_i32, %c0_i32_0 : i32, i32
  }
  func.func @transform_7(%arg0: i32, %arg1: i32) -> (i32, i32) {
    %c0_i32 = arith.constant 0 : i32
    %c0_i32_0 = arith.constant 0 : i32
    %c0_i32_1 = arith.constant 0 : i32
    return %c0_i32, %c0_i32_0 : i32, i32
  }
  func.func @transform_8(%arg0: i32, %arg1: i32) -> (i32, i32) {
    %c0_i32 = arith.constant 0 : i32
    %c0_i32_0 = arith.constant 0 : i32
    %c0_i32_1 = arith.constant 0 : i32
    return %c0_i32, %c0_i32_0 : i32, i32
  }
  func.func @transform_9(%arg0: i32, %arg1: i32) -> (i32, i32) {
    %c0_i32 = arith.constant 0 : i32
    %c0_i32_0 = arith.constant 0 : i32
    %c0_i32_1 = arith.constant 0 : i32
    return %c0_i32, %c0_i32_0 : i32, i32
  }
  func.func @transform_10(%arg0: i32, %arg1: i32) -> (i32, i32) {
    %c0_i32 = arith.constant 0 : i32
    %c0_i32_0 = arith.constant 0 : i32
    %c0_i32_1 = arith.constant 0 : i32
    return %c0_i32, %c0_i32_0 : i32, i32
  }
  func.func @transform_11(%arg0: i32, %arg1: i32) -> (i32, i32) {
    %c0_i32 = arith.constant 0 : i32
    %c0_i32_0 = arith.constant 0 : i32
    %c0_i32_1 = arith.constant 0 : i32
    return %c0_i32, %c0_i32_0 : i32, i32
  }
  func.func @transform_12(%arg0: i32, %arg1: i32) -> (i32, i32, i32) {
    %c0_i32 = arith.constant 0 : i32
    %c0_i32_0 = arith.constant 0 : i32
    return %arg0, %arg1, %c0_i32 : i32, i32, i32
  }
}

</mosaic_0001>

<bundles_post_ra>
// kernel: tpu_custom_call.1
= control target key start
LH: loop header
LB: loop body
LE: loop exit
PB: predicated region body
PF: predicated region fallthrough
CT: control target
= control target key end

     0   :  { %s1580_s0 = inlined_call_operand.vmem [shape: f32[2,8,32], index: 0, kind: input, shape index: {}]   ;;  %s1581_s1 = inlined_call_operand.vmem [shape: f32[32,96], index: 1, kind: input, shape index: {}]   ;;  %s1582_s2 = inlined_call_operand.vmem [shape: f32[32,32], index: 2, kind: input, shape index: {}]   ;;  %s1583_s3 = inlined_call_operand.vmem [shape: f32[1,32], index: 3, kind: input, shape index: {}]   ;;  %s1584_s4 = inlined_call_operand.vmem [shape: f32[1,32], index: 4, kind: input, shape index: {}]   ;;  %s1585_s5 = inlined_call_operand.vmem [shape: f32[1,32], index: 5, kind: input, shape index: {}]   ;;  %s1586_s6 = inlined_call_operand.vmem [shape: f32[32,128], index: 6, kind: input, shape index: {}]   ;;  %s1587_s7 = inlined_call_operand.vmem [shape: f32[1,128], index: 7, kind: input, shape index: {}]   ;;  %s1588_s8 = inlined_call_operand.vmem [shape: f32[128,32], index: 8, kind: input, shape index: {}]   ;;  %s1589_s9 = inlined_call_operand.vmem [shape: f32[1,32], index: 9, kind: input, shape index: {}]   ;;  %s1590_s10 = inlined_call_operand.vmem [shape: f32[1,32], index: 10, kind: input, shape index: {}]   ;;  %s1591_s11 = inlined_call_operand.vmem [shape: f32[1,32], index: 11, kind: input, shape index: {}]   ;;  %s1592_s12 = inlined_call_operand.hbm [shape: f32[2,8,32], index: 12, kind: output, shape index: {}]  }
   0x1   :  { %1595 = sst [smem:[#allocation11_spill]] %s1580_s0 }
   0x2   :  { %17 = vsyncpa [#allocation6], 0 }
   0x3   :  { %19 = vsyncpa [#allocation6 + $0x1], 0  ;;  %s1328_s21 = smov 0   ;;  %s1330_s22 = smov 0  }
   0x4   :  { %s1332_s23 = smov 0   ;;  %s1334_s24 = smov 0  }
   0x5   :  { %s1336_s25 = smov 0   ;;  %s1338_s26 = smov 0  }
   0x6 LB: > { %1596 = sst [smem:[#allocation8_spill]] %s1245_s25  ;;  %s1051_s27 = sadd.s32 4294967295, %s1249_s26   ;;  %s1249_s26 = sphi %s1338_s26, %s25_s26   ;;  %s1245_s25 = sphi %s1336_s25, %s1604_s25   ;;  %s1241_s24 = sphi %s1334_s24, %s1603_s24   ;;  %s1237_s23 = sphi %s1332_s23, %s1607_s23   ;;  %s1233_s22 = sphi %s1330_s22, %s1606_s22   ;;  %s1229_s21 = sphi %s1328_s21, %s1605_s21  }
   0x7   : > { %s1052_s28 = sadd.s32 4294967294, %s1249_s26   ;;  %s37_s29 = sadd.s32 1, %s1245_s25 }
   0x8   : > { %s303_s30 = sadd.s32 1, %s1237_s23  ;;  %p39_p0 = scmp.ge.s32.totalorder %s37_s29, 2 }
   0x9   : > { %p313_p1 = scmp.ne.s32.totalorder %s1237_s23, %s1233_s22  ;;  %p314_p2 = scmp.eq.s32.totalorder %s1051_s27, 1 }
   0xa   : > { %p319_p3 = scmp.ne.s32.totalorder %s1233_s22, %s1229_s21  ;;  %s1609_s29 = smov (%p39_p0, %s37_s29), 0 }
   0xb   : > { %1597 = sst [smem:[#allocation9_spill]] %s1609_s29  ;;  %p1368_p4 = por %p314_p2, %p313_p1 }
   0xc   : > { %p320_p5 = scmp.eq.s32.totalorder %s1052_s28, 1  ;;  %s298_s14 = ssub.s32 %s1245_s25, %s1609_s29 }
   0xd   : > { %p1054_p6 = scmp.ge.s32.totalorder %s1249_s26, 1  ;;  %p301_p7 = scmp.eq.s32.totalorder %s298_s14, 0 }
   0xe   : > { %p1375_p8 = por %p320_p5, %p319_p3  ;;  %p378_p9 = scmp.lt.s32.totalorder %s1249_s26, 3 }
   0xf   : > { %s1381_s16 = scalar_select %p301_p7, %s1237_s23, %s303_s30  }
  0x10   : > { %p379_p10 = pnand %p1054_p6, %p378_p9 }
  0x11   : > { %1600 = sst [smem:[#allocation10_spill]] %s1381_s16  ;;  %p419_p11 = scmp.lt.s32.totalorder (!%p379_p10), %s1241_s24, 1 }
  0x12   : > { %382 = sbr.rel (%p379_p10) target bundleno = 2215 (0x8a7), region = 68  ;;  %s1601_s0 = sld [smem:[#allocation11_spill]] (!%p379_p10) }
  0x13   : > { %s1251_s19 = smov (!%p379_p10), 64   ;;  %s1252_s29 = smov (!%p379_p10), 120  }
  0x14   : > { %s1253_s20 = smov (!%p379_p10), 112   ;;  %s1254_s25 = smov (!%p379_p10), 104  }
  0x15   : > { %s1256_s27 = smov (!%p379_p10), 88   ;;  %s1257_s28 = smov (!%p379_p10), 72  }
  0x16   : > { %s1259_s14 = smov (!%p379_p10), 8   ;;  %s1261_s18 = smov (!%p379_p10), 16  }
  0x17   : > { %v431_v0 = vld [vmem:[%s1581_s1 + $0x18] sm:$0xff]  ;;  %v430_v1 = vld [vmem:[%s1581_s1 + $0x10] sm:$0xff]  ;;  %v429_v2 = vld [vmem:[%s1581_s1 + $0x8] sm:$0xff]  ;;  %s420_s30 = scalar_select %p419_p11, %s1241_s24, 1  ;;  %vm432_vm0 = vcmask 261120   ;;  %vm456_vm1 = vcmask 523264  }
  0x18   : > { %448 = vmatpush.msra.mxu1 %v431_v0  ;;  %v428_v3 = vld [vmem:[%s1581_s1] sm:$0xff]  ;;  %vm494_vm2 = vcmask 64512   ;;  %v777_v0 = vld [vmem:[%s1582_s2 + $0x18] sm:$0xff]  ;;  %vm767_vm3 = vcmask 130048   ;;  %vm769_vm4 = vcmask 195584  }
  0x19   : > { %s1056_s17 = sshll.u32 %s420_s30, 3  ;;  %s1258_s30 = smov 80  }
  0x1a   : > { %449 = vmatpush.msra.mxu1 %v430_v1  ;;  %s422_s16 = scalar_lea.vmem %s1601_s0, %s1056_s17  ;;  %s1260_s17 = smov 24   ;;  %v776_v1 = vld [vmem:[%s1582_s2 + $0x10] sm:$0xff] }
  0x1b   : > { %v1400_v4 = vld [vmem:[%s422_s16] sm:$0xff]  ;;  %s1255_s16 = smov 96  }
  0x1c   : > { %450 = vmatpush.msra.mxu1 %v429_v2  ;;  %v775_v2 = vld [vmem:[%s1582_s2 + $0x8] sm:$0xff] }
  0x1e   : > { %451 = vmatpush.msra.mxu1 %v428_v3  ;;  %v774_v3 = vld [vmem:[%s1582_s2] sm:$0xff] }
  0x1f   : > { %1057 = vmatmul.msk.f32.vlgmr.msra.gmra.mxu1 %vm432_vm0, %v1400_v4 }
  0x9c   : > { %v453_v5 = vpop.f32.mrf.mxu1 }
  0x9d   : > { %457 = vst.msk [vmem:[#allocation2] sm:$0xff] %vm456_vm1, %v453_v5  ;;  %459 = vrot.lane.b32.xlu0 %v453_v5, %s1251_s19 }
  0xa4   : > { %v1404_v6 = vld [vmem:[#allocation2] sm:$0xff] }
  0xa5   : > { %569 = vrot.lane.b32.xlu2 %v1404_v6, %s1252_s29 }
  0xad   : > { %631 = vrot.lane.b32.xlu2 %v1404_v6, %s1253_s20 }
  0xb5   : > { %693 = vrot.lane.b32.xlu2 %v1404_v6, %s1254_s25  ;;  %s416_s25 = sand.u32 1, %s1233_s22  }
  0xff   : > { %v570_v12 = vpop.permute.xlu2 %569 }
 0x107   : > { %v632_v18 = vpop.permute.xlu2 %631 }
 0x10f   : > { %v460_v7 = vpop.permute.xlu0 %459  ;;  %v694_v20 = vpop.permute.xlu2 %693 }
 0x110   : > { %462 = vxpose.xlu0.b32.start.end [1/1] (short) (narrow) %v460_v7, 32 }
 0x1b4   : > { %v478_v8 = vpop.trf.xlu0 }
 0x1b5   : > { %495 = vst.msk [vmem:[#allocation3] sm:$0xff] %vm494_vm2, %v478_v8 }
 0x1bc   : > { %v479_v9 = vpop.trf.xlu0  ;;  %v504_v10 = vld [vmem:[#allocation3] sm:$0xff] }
 0x1bd   : > { %496 = vst.msk [vmem:[#allocation3 + $0x8] sm:$0xff] %vm494_vm2, %v479_v9  ;;  %525 = vmatpush.msrb.mxu1 %v504_v10 }
 0x1be   : > { %1058 = vmatmul.msk.f32.vlgmr.msrb.gmra.mxu1 %vm494_vm2, %v1404_v6 }
 0x1c4   : > { %v568_v11 = vld [vmem:[#allocation3 + $0x8] sm:$0xff]  ;;  %v480_v17 = vpop.trf.xlu0 }
 0x1c5   : > { %588 = vmatpush.msra.mxu3 %v568_v11  ;;  %497 = vst.msk [vmem:[#allocation3 + $0x10] sm:$0xff] %vm494_vm2, %v480_v17 }
 0x1c6   : > { %1060 = vmatmul.msk.f32.vlgmr.msra.gmra.mxu3 %vm494_vm2, %v570_v12 }
 0x1cc   : > { %v481_v19 = vpop.trf.xlu0  ;;  %v630_v30 = vld [vmem:[#allocation3 + $0x10] sm:$0xff] }
 0x1cd   : > { %498 = vst.msk [vmem:[#allocation3 + $0x18] sm:$0xff] %vm494_vm2, %v481_v19 }
 0x1d4   : > { %v692_v32 = vld [vmem:[#allocation3 + $0x18] sm:$0xff] }
 0x23b   : > { %v527_v13 = vpop.f32.mrf.mxu1 }
 0x23c   : > { %v530_v14 = vsel %vm494_vm2, %v527_v13, -inf }
 0x23d   : > { %531 = vmax.xlane.f32.xlu1 %v530_v14 }
 0x249   : > { %v590_v15 = vpop.f32.mrf.mxu3 }
 0x24a   : > { %v593_v16 = vsel %vm494_vm2, %v590_v15, -inf }
 0x24b   : > { %594 = vmax.xlane.f32.xlu2 %v593_v16 }
 0x256   : > { %541 = vrot.lane.b32.xlu1 %v1404_v6, %s1255_s16  ;;  %s1055_s16 = sshll.u32 %s416_s25, 3 }
 0x257   : > { %s418_s20 = scalar_lea.vmem [#allocation5], %s1055_s16  ;;  %s1191_s16 = scalar_lea.hbm %s1592_s12, 16 }
 0x263   : > { %603 = vrot.lane.b32.xlu2 %v1404_v6, %s1256_s27  ;;  %s1069_s27 = sshll.u32 %s1241_s24, 3  ;;  %s973_s24 = sshll.u32 %s418_s20, 4  ;;  %s974_s24 = int_to_ptr.vmem [resolvable:$true] %s973_s24 }
 0x26b   : > { %727 = vrot.lane.b32.xlu2 %v1404_v6, %s1257_s28  ;;  %s960_s28 = scalar_lea.sflag [#allocation6], %s416_s25 }
 0x2b0   : > { %v532_v21 = vpop.xlane.xlu1 %531 }
 0x2b1   : > { %v533_v22 = vsub.f32 %v527_v13, %v532_v21 }
 0x2b3   : > { %v534_v23 = vmul.f32 1.442695, %v533_v22 }
 0x2b5   : > { %1147 = vpow2.f32 %v534_v23 }
 0x2bb   : > { %v1148_v28 = vpop.eup %1147 }
 0x2bc   : > { %v536_v50 = vsel %vm494_vm2, %v1148_v28, 0.0 }
 0x2be   : > { %v595_v24 = vpop.xlane.xlu2 %594 }
 0x2bf   : > { %v596_v25 = vsub.f32 %v590_v15, %v595_v24  ;;  %v1140_v15 = vld [vmem:[%s1583_s3] ss:$0 sm:$0xff] }
 0x2c1   : > { %v597_v26 = vmul.f32 1.442695, %v596_v25 }
 0x2c3   : > { %1149 = vpow2.f32 %v597_v26 }
 0x2c6   : > { %v604_v27 = vpop.permute.xlu2 %603 }
 0x2c7   : > { %624 = vmatpush.msra.mxu1 %v604_v27 }
 0x2c8   : > { %v542_v29 = vpop.permute.xlu1 %541 }
 0x2c9   : > { %v1150_v31 = vpop.eup %1149  ;;  %562 = vmatpush.msra.mxu2 %v542_v29 }
 0x2ca   : > { %1059 = vmatmul.msk.f32.vlgmr.msra.gmra.mxu2 %vm494_vm2, %v1148_v28  ;;  %1061 = vmatmul.msk.f32.vlgmr.msra.gmra.mxu1 %vm494_vm2, %v1150_v31  ;;  %v599_v33 = vsel %vm494_vm2, %v1150_v31, 0.0  ;;  %v848_v31 = vld [vmem:[%s1586_s6 + $0x18] sm:$0xff] }
 0x2cb   : > { %600 = vadd.xlane.f32.xlu2 %v599_v33  ;;  %650 = vmatpush.msrb.mxu2 %v630_v30  ;;  %v846_v33 = vld [vmem:[%s1586_s6 + $0x8] sm:$0xff] }
 0x2cd   : > { %712 = vmatpush.msra.mxu2 %v692_v32  ;;  %v847_v32 = vld [vmem:[%s1586_s6 + $0x10] sm:$0xff] }
 0x2ce   : > { %v728_v34 = vpop.permute.xlu2 %727 }
 0x2cf   : > { %748 = vmatpush.msrb.mxu1 %v728_v34  ;;  %v845_v34 = vld [vmem:[%s1586_s6] sm:$0xff] }
 0x2d2   : > { %1062 = vmatmul.msk.f32.vlgmr.msrb.gmra.mxu2 %vm494_vm2, %v632_v18 }
 0x2d3   : > { %797 = vmatpush.msrb.mxu2 %v777_v0  ;;  %v886_v0 = vld [vmem:[%s1588_s8 + $0x8] sm:$0xff] }
 0x2d5   : > { %798 = vmatpush.msrb.mxu2 %v776_v1  ;;  %v885_v1 = vld [vmem:[%s1588_s8] sm:$0xff] }
 0x2d7   : > { %799 = vmatpush.msrb.mxu2 %v775_v2  ;;  %v1143_v2 = vld [vmem:[%s1587_s7] ss:$0 sm:$0xff] }
 0x2d9   : > { %800 = vmatpush.msrb.mxu2 %v774_v3 }
 0x2da   : > { %1064 = vmatmul.msk.f32.vlgmr.msra.gmra.mxu2 %vm494_vm2, %v694_v20  ;;  %v1262_v20 = vmov 32.0  }
 0x33e   : > { %v601_v52 = vpop.xlane.xlu2 %600 }
 0x347   : > { %v626_v53 = vpop.f32.mrf.mxu1 }
 0x34d   : > { %v564_v35 = vpop.f32.mrf.mxu2 }
 0x355   : > { %v652_v36 = vpop.f32.mrf.mxu2 }
 0x356   : > { %v655_v37 = vsel %vm494_vm2, %v652_v36, -inf }
 0x357   : > { %656 = vmax.xlane.f32.xlu1 %v655_v37  ;;  %v898_v37 = vld [vmem:[%s1588_s8 + $0x68] sm:$0xff] }
 0x35d   : > { %v714_v38 = vpop.f32.mrf.mxu2 }
 0x35e   : > { %v717_v39 = vsel %vm494_vm2, %v714_v38, -inf }
 0x35f   : > { %718 = vmax.xlane.f32.xlu0 %v717_v39 }
 0x370   : > { %665 = vrot.lane.b32.xlu1 %v1404_v6, %s1258_s30 }
 0x3ca   : > { %v657_v40 = vpop.xlane.xlu1 %656 }
 0x3cb   : > { %v658_v41 = vsub.f32 %v652_v36, %v657_v40  ;;  %v899_v36 = vld [vmem:[%s1588_s8 + $0x70] sm:$0xff]  ;;  %v897_v40 = vld [vmem:[%s1588_s8 + $0x60] sm:$0xff] }
 0x3cd   : > { %v659_v42 = vmul.f32 1.442695, %v658_v41 }
 0x3cf   : > { %1151 = vpow2.f32 %v659_v42 }
 0x3d2   : > { %v719_v43 = vpop.xlane.xlu0 %718 }
 0x3d3   : > { %v720_v44 = vsub.f32 %v714_v38, %v719_v43 }
 0x3d5   : > { %v1152_v45 = vpop.eup %1151  ;;  %v721_v46 = vmul.f32 1.442695, %v720_v44 }
 0x3d6   : > { %v661_v47 = vsel %vm494_vm2, %v1152_v45, 0.0 }
 0x3d7   : > { %1153 = vpow2.f32 %v721_v46  ;;  %662 = vadd.xlane.f32.xlu1 %v661_v47 }
 0x3d8   : > { %1155 = vrcp.f32 %v601_v52 }
 0x3dd   : > { %v1154_v48 = vpop.eup %1153 }
 0x3de   : > { %1065 = vmatmul.msk.f32.vlgmr.msrb.gmra.mxu1 %vm494_vm2, %v1154_v48  ;;  %v723_v49 = vsel %vm494_vm2, %v1154_v48, 0.0  ;;  %v1156_v54 = vpop.eup %1155  ;;  %v1141_v48 = vld [vmem:[%s1584_s4] ss:$0 sm:$0xff] }
 0x3df   : > { %724 = vadd.xlane.f32.xlu2 %v723_v49  ;;  %537 = vadd.xlane.f32.xlu1 %v536_v50  ;;  %v629_v55 = vmul.f32 %v1156_v54, %v626_v53  ;;  %v896_v54 = vld [vmem:[%s1588_s8 + $0x58] sm:$0xff] }
 0x3e2   : > { %v666_v51 = vpop.permute.xlu1 %665 }
 0x3e3   : > { %686 = vmatpush.msrb.mxu3 %v666_v51  ;;  %v1142_v51 = vld [vmem:[%s1585_s5] ss:$0 sm:$0xff] }
 0x3e4   : > { %1063 = vmatmul.msk.f32.vlgmr.msrb.gmra.mxu3 %vm494_vm2, %v1152_v45 }
 0x3e5   : > { %868 = vmatpush.msra.mxu3 %v848_v31 }
 0x3e7   : > { %869 = vmatpush.msra.mxu3 %v847_v32 }
 0x3e9   : > { %870 = vmatpush.msra.mxu3 %v846_v33 }
 0x3eb   : > { %871 = vmatpush.msra.mxu3 %v845_v34  ;;  %v1145_v34 = vld [vmem:[%s1590_s10] ss:$0 sm:$0xff] }
 0x3f7   : > { %755 = vrot.lane.b32.xlu2 %v629_v55, %s1259_s14  ;;  %v895_v55 = vld [vmem:[%s1588_s8 + $0x50] sm:$0xff] }
 0x44a   : > { %v663_v60 = vpop.xlane.xlu1 %662 }
 0x452   : > { %v725_v56 = vpop.xlane.xlu2 %724  ;;  %v538_v5 = vpop.xlane.xlu1 %537 }
 0x453   : > { %1157 = vrcp.f32 %v725_v56  ;;  %v894_v56 = vld [vmem:[%s1588_s8 + $0x48] sm:$0xff] }
 0x454   : > { %1159 = vrcp.f32 %v663_v60  ;;  %v890_v60 = vld [vmem:[%s1588_s8 + $0x28] sm:$0xff] }
 0x455   : > { %1161 = vrcp.f32 %v538_v5 }
 0x456   : > { %1163 = vrcp.f32 %v1262_v20 }
 0x459   : > { %v1158_v57 = vpop.eup %1157 }
 0x45a   : > { %v1160_v61 = vpop.eup %1159  ;;  %v756_v7 = vpop.permute.xlu2 %755 }
 0x45b   : > { %v750_v58 = vpop.f32.mrf.mxu1  ;;  %v1162_v6 = vpop.eup %1161 }
 0x45c   : > { %v753_v59 = vmul.f32 %v1158_v57, %v750_v58  ;;  %v567_v8 = vmul.f32 %v1162_v6, %v564_v35  ;;  %v1164_v21 = vpop.eup %1163  ;;  %v900_v35 = vld [vmem:[%s1588_s8 + $0x78] sm:$0xff]  ;;  %v893_v57 = vld [vmem:[%s1588_s8 + $0x40] sm:$0xff] }
 0x45d   : > { %v812_v22 = vmul.f32 32.0, %v1164_v21  ;;  %vm816_vm5 = vweird.f32 %v1164_v21  ;;  %905 = vmatpush.msra.mxu0 %v900_v35  ;;  %v892_v58 = vld [vmem:[%s1588_s8 + $0x38] sm:$0xff] }
 0x45e   : > { %763 = vrot.lane.b32.xlu2 %v753_v59, %s1260_s17  ;;  %v766_v9 = vsel %vm494_vm2, %v567_v8, %v756_v7  ;;  %v891_v59 = vld [vmem:[%s1588_s8 + $0x30] sm:$0xff] }
 0x45f   : > { %v813_v23 = vsub.f32 1.0, %v812_v22  ;;  %906 = vmatpush.msra.mxu0 %v899_v36  ;;  %v1146_v36 = vld [vmem:[%s1591_s11] ss:$0 sm:$0xff] }
 0x461   : > { %v814_v24 = vmul.f32 %v1164_v21, %v813_v23  ;;  %907 = vmatpush.msra.mxu0 %v898_v37 }
 0x463   : > { %v815_v25 = vadd.f32 %v1164_v21, %v814_v24  ;;  %908 = vmatpush.msra.mxu0 %v897_v40 }
 0x465   : > { %v1454_v26 = vsel %vm816_vm5, %v1164_v21, %v815_v25  ;;  %909 = vmatpush.msra.mxu0 %v896_v54 }
 0x467   : > { %v688_v62 = vpop.f32.mrf.mxu3  ;;  %910 = vmatpush.msra.mxu0 %v895_v55 }
 0x468   : > { %v691_v63 = vmul.f32 %v1160_v61, %v688_v62  ;;  %v889_v61 = vld [vmem:[%s1588_s8 + $0x20] sm:$0xff]  ;;  %v888_v62 = vld [vmem:[%s1588_s8 + $0x18] sm:$0xff] }
 0x469   : > { %911 = vmatpush.msra.mxu0 %v894_v56 }
 0x46a   : > { %759 = vrot.lane.b32.xlu1 %v691_v63, %s1261_s18  ;;  %v887_v63 = vld [vmem:[%s1588_s8 + $0x10] sm:$0xff]  ;;  %s971_s18 = scalar_lea.hbm %s1592_s12, %s1069_s27 }
 0x46b   : > { %912 = vmatpush.msra.mxu0 %v893_v57  ;;  %s975_s0 = sshll.u32 %s971_s18, 4  ;;  %s976_s0 = int_to_ptr.hbm [resolvable:$true] %s975_s0 }
 0x46c   : > { %s1185_s30 = sshra.s32 %s976_s0, 4  ;;  %s1186_s30 = int_to_ptr.hbm [resolvable:$true] %s1185_s30 }
 0x46d   : > { %913 = vmatpush.msra.mxu0 %v892_v58  ;;  %s1187_s27 = scalar_lea.hbm %s1186_s30, 8  ;;  %p1192_p1 = scmp.lt.s32.totalorder %s1186_s30, %s1592_s12 }
 0x46e   : > { %p1188_p12 = scmp.ne.s32.totalorder %s1186_s30, %s1187_s27  ;;  %p1193_p2 = scmp.lt.s32.totalorder %s1191_s16, %s1187_s27 }
 0x46f   : > { %914 = vmatpush.msra.mxu0 %v891_v59 }
 0x470   : > { %p1189_p13 = pnand %p1188_p12, %p1368_p4  ;;  %p1194_p3 = por %p1193_p2, %p1192_p1 }
 0x471   : > { %915 = vmatpush.msra.mxu0 %v890_v60 }
 0x472   : > { %p1190_p0 = pneg %p1189_p13 }
 0x473   : > { %916 = vmatpush.msra.mxu0 %v889_v61 }
 0x474   : > { %p1195_p5 = pnand %p1194_p3, %p1190_p0 }
 0x475   : > { %917 = vmatpush.msra.mxu0 %v888_v62 }
 0x477   : > { %918 = vmatpush.msra.mxu0 %v887_v63 }
 0x479   : > { %919 = vmatpush.msra.mxu0 %v886_v0 }
 0x47b   : > { %920 = vmatpush.msra.mxu0 %v885_v1 }
 0x4b8   : > { %v764_v11 = vpop.permute.xlu2 %763 }
 0x4dc   : > { %v760_v10 = vpop.permute.xlu1 %759 }
 0x4dd   : > { %v768_v12 = vsel %vm767_vm3, %v766_v9, %v760_v10 }
 0x4de   : > { %v770_v13 = vsel %vm769_vm4, %v768_v12, %v764_v11 }
 0x4df   : > { %772 = vst.msk [vmem:[#allocation4] sm:$0xff] %vm432_vm0, %v770_v13 }
 0x4e6   : > { %v773_v14 = vld [vmem:[#allocation4] sm:$0xff] }
 0x4e7   : > { %1066 = vmatmul.msk.f32.vlgmr.msrb.gmra.mxu2 %vm432_vm0, %v773_v14 }
 0x56a   : > { %v802_v16 = vpop.f32.mrf.mxu2 }
 0x56b   : > { %v803_v17 = vadd.f32 %v1140_v15, %v802_v16  ;;  %v1144_v15 = vld [vmem:[%s1589_s9] ss:$0 sm:$0xff] }
 0x56d   : > { %v805_v18 = vadd.f32 %v803_v17, %v1400_v4 }
 0x56f   : > { %v808_v19 = vsel %vm432_vm0, %v805_v18, 0.0 }
 0x570   : > { %809 = vadd.xlane.f32.xlu1 %v808_v19 }
 0x5e3   : > { %v810_v27 = vpop.xlane.xlu1 %809 }
 0x5e4   : > { %v818_v28 = vmul.f32 %v1454_v26, %v810_v27 }
 0x5e6   : > { %v819_v29 = vsub.f32 %v805_v18, %v818_v28 }
 0x5e8   : > { %v820_v30 = vmul.f32 %v819_v29, %v819_v29 }
 0x5ea   : > { %v821_v4 = vsel %vm432_vm0, %v820_v30, 0.0 }
 0x5eb   : > { %822 = vadd.xlane.f32.xlu2 %v821_v4 }
 0x65e   : > { %v823_v38 = vpop.xlane.xlu2 %822 }
 0x65f   : > { %v824_v39 = vmul.f32 %v823_v38, %v1454_v26 }
 0x661   : > { %v825_v41 = vadd.f32 1e-05, %v824_v39 }
 0x663   : > { %1165 = vrsqrt.f32 %v825_v41  ;;  %vm832_vm7 = vweird.f32 %v825_v41 }
 0x669   : > { %v1166_v42 = vpop.eup %1165 }
 0x66a   : > { %v827_v43 = vmul.f32 %v1166_v42, %v825_v41  ;;  %vm833_vm6 = vweird.f32 %v1166_v42 }
 0x66b   : > { %vm834_vm8 = vmor %vm832_vm7, %vm833_vm6 }
 0x66c   : > { %v828_v44 = vmul.f32 %v1166_v42, %v827_v43 }
 0x66e   : > { %v829_v45 = vmul.f32 0.5, %v828_v44 }
 0x670   : > { %v830_v46 = vsub.f32 1.5, %v829_v45 }
 0x672   : > { %v831_v47 = vmul.f32 %v1166_v42, %v830_v46 }
 0x674   : > { %v835_v49 = vsel %vm834_vm8, %v1166_v42, %v831_v47 }
 0x675   : > { %v836_v50 = vmul.f32 %v835_v49, %v819_v29 }
 0x677   : > { %v840_v52 = vmul.f32 %v1141_v48, %v836_v50 }
 0x679   : > { %v844_v53 = vadd.f32 %v1142_v51, %v840_v52 }
 0x67b   : > { %1067 = vmatmul.msk.f32.vlgmr.msra.gmra.mxu3 %vm432_vm0, %v844_v53 }
 0x6fe   : > { %v873_v3 = vpop.f32.mrf.mxu3 }
 0x6ff   : > { %v874_v5 = vadd.f32 %v1143_v2, %v873_v3 }
 0x701   : > { %v877_v6 = vmul.f32 %v874_v5, %v874_v5  ;;  %v876_v12 = vmul.f32 0.5, %v874_v5 }
 0x703   : > { %v878_v7 = vmul.f32 %v877_v6, %v874_v5 }
 0x705   : > { %v879_v8 = vmul.f32 0.044715, %v878_v7 }
 0x707   : > { %v880_v9 = vadd.f32 %v879_v8, %v874_v5 }
 0x709   : > { %v881_v10 = vmul.f32 0.7978846, %v880_v9 }
 0x70b   : > { %1167 = vtanh.f32 %v881_v10 }
 0x711   : > { %v1168_v11 = vpop.eup %1167 }
 0x712   : > { %v883_v13 = vadd.f32 1.0, %v1168_v11 }
 0x714   : > { %v884_v14 = vmul.f32 %v883_v13, %v876_v12 }
 0x716   : > { %921 = vmatmul.f32.vlgmr.msra.gmra.mxu0 %v884_v14 }
 0x793   : > { %v922_v16 = vpop.f32.mrf.mxu0 }
 0x794   : > { %v923_v17 = vadd.f32 %v1144_v15, %v922_v16 }
 0x796   : > { %v925_v18 = vadd.f32 %v923_v17, %v844_v53 }
 0x798   : > { %v928_v19 = vsel %vm432_vm0, %v925_v18, 0.0 }
 0x799   : > { %929 = vadd.xlane.f32.xlu0 %v928_v19 }
 0x80c   : > { %v930_v20 = vpop.xlane.xlu0 %929 }
 0x80d   : > { %v931_v21 = vmul.f32 %v930_v20, %v1454_v26 }
 0x80f   : > { %v932_v22 = vsub.f32 %v925_v18, %v931_v21 }
 0x811   : > { %v933_v23 = vmul.f32 %v932_v22, %v932_v22 }
 0x813   : > { %v934_v24 = vsel %vm432_vm0, %v933_v23, 0.0 }
 0x814   : > { %935 = vadd.xlane.f32.xlu0 %v934_v24 }
 0x887   : > { %v936_v25 = vpop.xlane.xlu0 %935 }
 0x888   : > { %v937_v27 = vmul.f32 %v936_v25, %v1454_v26 }
 0x88a   : > { %v938_v28 = vadd.f32 1e-05, %v937_v27 }
 0x88c   : > { %1169 = vrsqrt.f32 %v938_v28  ;;  %vm945_vm10 = vweird.f32 %v938_v28 }
 0x892   : > { %v1170_v29 = vpop.eup %1169 }
 0x893   : > { %v940_v30 = vmul.f32 %v1170_v29, %v938_v28  ;;  %vm946_vm9 = vweird.f32 %v1170_v29 }
 0x894   : > { %vm947_vm11 = vmor %vm945_vm10, %vm946_vm9 }
 0x895   : > { %v941_v4 = vmul.f32 %v1170_v29, %v940_v30 }
 0x897   : > { %v942_v31 = vmul.f32 0.5, %v941_v4 }
 0x899   : > { %v943_v32 = vsub.f32 1.5, %v942_v31 }
 0x89b   : > { %v944_v33 = vmul.f32 %v1170_v29, %v943_v32 }
 0x89d   : > { %v948_v26 = vsel %vm947_vm11, %v1170_v29, %v944_v33 }
 0x89e   : > { %v949_v35 = vmul.f32 %v948_v26, %v932_v22 }
 0x8a0   : > { %v953_v37 = vmul.f32 %v1145_v34, %v949_v35 }
 0x8a2   : > { %v957_v38 = vadd.f32 %v1146_v36, %v953_v37 }
 0x8a4   : > { %958 = vst.msk [vmem:[%s418_s20] sm:$0xff] %vm432_vm0, %v957_v38 }
 0x8a5   : > { %1198 = shalt.err (!%p1195_p5)
}
 0x8a6   : > { %1072 = dma.vmem_to_hbm [thread:$0]  (%p1368_p4), %s974_s24, 128, %s976_s0, %s960_s28  }
 0x8a7 PF: > { %p1078_p6 = scmp.ge.s32.totalorder %s1249_s26, 2  ;;  %s987_s25 = sand.u32 1, %s1229_s21  }
 0x8a8   : > { %s988_s29 = scalar_lea.sflag [#allocation6], %s987_s25 }
 0x8a9   : > { %p1075_p7 = pnand %p1078_p6, %p1375_p8 }
 0x8ab   : > { %p1076_p9 = pneg %p1075_p7 }
 0x8ad   : > { %1224 = dma.done.wait (%p1076_p9), %s988_s29, 128  }
 0x8ae   : > { %1226 = vsyncadd (%p1076_p9), %s988_s29, 4294967168  ;;  %s25_s26 = sadd.s32 1, %s1249_s26   ;;  %s1602_s20 = sld [smem:[#allocation10_spill]] }
 0x8af   : > { %p22_p10 = scmp.ge.s32.totalorder %s25_s26, 4   ;;  %s1603_s24 = sld [smem:[#allocation8_spill]] }
 0x8b0   : > { %s1604_s25 = sld [smem:[#allocation9_spill]]  ;;  %s1605_s21 = smov %s1233_s22 }
 0x8b1   : > { %s1606_s22 = smov %s1237_s23  ;;  %24 = sbr.rel (!%p22_p10) target bundleno = 6 (0x6), region = 109 }
 0x8b4   : > { %s1607_s23 = smov %s1602_s20 }
 0x8b6   :  { %994 = vsyncpa [#allocation6], 1 }
 0x8b7   :  { %996 = vsyncpa [#allocation6 + $0x1], 1 }

</bundles_post_ra>
